<compile_context>
chip_gen: v7x
topology: tpu7x:2x2x1
jax: 0.10.0
libtpu: 0.0.40
codegen_flags: <defaults>
</compile_context>

<pallas_src>
import jax
import jax.numpy as jnp
from jax.experimental import pallas as pl
from jax.experimental.pallas import tpu as pltpu

# ---- synthetic model dims (small, consistent with a token-classification forward) ----
VOCAB = 100
MAX_POS = 16
HIDDEN = 32
NUM_HEADS = 2
HEAD_DIM = HIDDEN // NUM_HEADS
FFN = 64
NUM_CLASS = 9            # args.num_class
C_PAD = 128              # lane-dense padded classifier width
LN_EPS = 1e-12
NEG_INF = -1e9

W_NAMES = ("wqkv", "bqkv", "wo", "bo", "ln1_g", "ln1_b",
           "w1", "b1", "w2", "b2", "ln2_g", "ln2_b", "wc", "bc")


def _gelu(x):
    # tanh-approximate GELU (EUP-friendly; avoids erf lowering)
    return 0.5 * x * (1.0 + jnp.tanh(0.7978845608028654 * (x + 0.044715 * x * x * x)))


def _layernorm(x, gamma, beta):
    mu = jnp.mean(x, axis=-1, keepdims=True)
    var = jnp.mean((x - mu) ** 2, axis=-1, keepdims=True)
    return (x - mu) * jax.lax.rsqrt(var + LN_EPS) * gamma + beta


# --------------------------------------------------------------------------------------
# Shared encoder + classifier body: whole batch at once, lane-dense padded logits.
# --------------------------------------------------------------------------------------
def _encoder_body(x_ref, bias_ref,
                  wqkv_ref, bqkv_ref, wo_ref, bo_ref,
                  g1_ref, be1_ref, w1_ref, b1_ref, w2_ref, b2_ref,
                  g2_ref, be2_ref, wc_ref, bc_ref):
    B, S, H = x_ref.shape
    x = x_ref[...]                                     # (B, S, H)
    x_flat = x.reshape(B * S, H)                       # (B*S, H)
    bias = bias_ref[...]                               # (B, 1, S): 0 valid, -1e9 pad
    scale = 1.0 / (HEAD_DIM ** 0.5)

    # fused QKV projection: one (B*S, H) x (H, 3H) matmul
    qkv = jnp.dot(x_flat, wqkv_ref[...],
                  preferred_element_type=jnp.float32) + bqkv_ref[...]   # (B*S, 3H)

    ctx_heads = []
    for h in range(NUM_HEADS):                         # static, tiny (2 iterations)
        q = qkv[:, h * HEAD_DIM:(h + 1) * HEAD_DIM].reshape(B, S, HEAD_DIM)
        k = qkv[:, HIDDEN + h * HEAD_DIM: HIDDEN + (h + 1) * HEAD_DIM].reshape(B, S, HEAD_DIM)
        v = qkv[:, 2 * HIDDEN + h * HEAD_DIM: 2 * HIDDEN + (h + 1) * HEAD_DIM].reshape(B, S, HEAD_DIM)
        s = jnp.einsum('bqd,bkd->bqk', q, k,
                       preferred_element_type=jnp.float32) * scale + bias   # (B, S, S)
        s = s - jnp.max(s, axis=-1, keepdims=True)
        p = jnp.exp(s)
        p = p * pl.reciprocal(jnp.sum(p, axis=-1, keepdims=True), approx=True)
        ctx = jnp.einsum('bqk,bkd->bqd', p, v,
                         preferred_element_type=jnp.float32)                # (B, S, HD)
        ctx_heads.append(ctx)

    # fused output projection on the concatenated context: one (B*S, H) x (H, H) matmul
    ctx_flat = jnp.concatenate(ctx_heads, axis=-1).reshape(B * S, H)
    attn = jnp.dot(ctx_flat, wo_ref[...],
                   preferred_element_type=jnp.float32) + bo_ref[...]

    h1 = _layernorm(x_flat + attn, g1_ref[...], be1_ref[...])
    ff = jnp.dot(_gelu(jnp.dot(h1, w1_ref[...], preferred_element_type=jnp.float32)
                       + b1_ref[...]),
                 w2_ref[...], preferred_element_type=jnp.float32) + b2_ref[...]
    h2 = _layernorm(h1 + ff, g2_ref[...], be2_ref[...])

    # classifier head, lane-dense padded to 128 classes
    logits = jnp.dot(h2, wc_ref[...], preferred_element_type=jnp.float32) + bc_ref[...]
    return logits.reshape(B, S, C_PAD)


def encoder_logits_kernel(x_ref, bias_ref,
                          wqkv_ref, bqkv_ref, wo_ref, bo_ref,
                          g1_ref, be1_ref, w1_ref, b1_ref, w2_ref, b2_ref,
                          g2_ref, be2_ref, wc_ref, bc_ref,
                          out_ref):
    out_ref[...] = _encoder_body(x_ref, bias_ref,
                                 wqkv_ref, bqkv_ref, wo_ref, bo_ref,
                                 g1_ref, be1_ref, w1_ref, b1_ref, w2_ref, b2_ref,
                                 g2_ref, be2_ref, wc_ref, bc_ref)


def encoder_logits_loss_kernel(x_ref, bias_ref, labels_ref,
                               wqkv_ref, bqkv_ref, wo_ref, bo_ref,
                               g1_ref, be1_ref, w1_ref, b1_ref, w2_ref, b2_ref,
                               g2_ref, be2_ref, wc_ref, bc_ref,
                               out_ref, loss_ref):
    logits_p = _encoder_body(x_ref, bias_ref,
                             wqkv_ref, bqkv_ref, wo_ref, bo_ref,
                             g1_ref, be1_ref, w1_ref, b1_ref, w2_ref, b2_ref,
                             g2_ref, be2_ref, wc_ref, bc_ref)        # (B, S, C_PAD)
    out_ref[...] = logits_p

    # fused CrossEntropyLoss(ignore_index=-1), mean over non-ignored tokens.
    B, S, _ = logits_p.shape
    labels = labels_ref[...].reshape(B, S, 1)                        # (B, S, 1) i32
    cls = jax.lax.broadcasted_iota(jnp.int32, (B, S, C_PAD), 2)      # (B, S, C_PAD)
    cls_mask = cls < NUM_CLASS                                       # exclude pad classes
    logits_m = jnp.where(cls_mask, logits_p, NEG_INF)
    m = jnp.max(logits_m, axis=-1, keepdims=True)
    lse = jnp.log(jnp.sum(jnp.exp(logits_m - m), axis=-1, keepdims=True)) + m   # (B,S,1)
    onehot = (cls == labels).astype(jnp.float32)
    picked = jnp.sum(logits_p * onehot, axis=-1, keepdims=True)                 # (B,S,1)
    valid = (labels != -1).astype(jnp.float32)                                  # (B,S,1)
    total = jnp.sum((lse - picked) * valid)
    count = jnp.sum(valid)
    # guard against all-ignored batch (PyTorch returns NaN; we return 0-safe value)
    loss_ref[0, 0] = total / jnp.maximum(count, 1.0)


# --------------------------------------------------------------------------------------
# Wrappers
# --------------------------------------------------------------------------------------
def init_params(key):
    ks = jax.random.split(key, 8)
    nrm = lambda k, s: (0.02 * jax.random.normal(k, s)).astype(jnp.float32)
    wc = nrm(ks[6], (HIDDEN, NUM_CLASS))
    wc_pad = jnp.zeros((HIDDEN, C_PAD), jnp.float32).at[:, :NUM_CLASS].set(wc)
    p = {
        "word_emb": nrm(ks[0], (VOCAB, HIDDEN)),
        "pos_emb":  nrm(ks[1], (MAX_POS, HIDDEN)),
        "wqkv": nrm(ks[2], (HIDDEN, 3 * HIDDEN)),          # fused Q|K|V
        "bqkv": jnp.zeros((1, 3 * HIDDEN), jnp.float32),
        "wo": nrm(ks[3], (HIDDEN, HIDDEN)),                # fused output projection
        "bo": jnp.zeros((1, HIDDEN), jnp.float32),
        "ln1_g": jnp.ones((1, HIDDEN), jnp.float32),
        "ln1_b": jnp.zeros((1, HIDDEN), jnp.float32),
        "w1": nrm(ks[4], (HIDDEN, FFN)),
        "b1": jnp.zeros((1, FFN), jnp.float32),
        "w2": nrm(ks[5], (FFN, HIDDEN)),
        "b2": jnp.zeros((1, HIDDEN), jnp.float32),
        "ln2_g": jnp.ones((1, HIDDEN), jnp.float32),
        "ln2_b": jnp.zeros((1, HIDDEN), jnp.float32),
        "wc": wc_pad,                                      # lane-dense padded classifier
        "bc": jnp.zeros((1, C_PAD), jnp.float32),
    }
    return p


def _prep_inputs(params, input_ids, attention_mask):
    B, S = input_ids.shape
    # glue: embedding lookup + position embedding (not the matmul hot path)
    x = params["word_emb"][input_ids] + params["pos_emb"][jnp.arange(S)][None]
    x = x.astype(jnp.float32)
    attn_bias = ((1.0 - attention_mask.astype(jnp.float32)) * NEG_INF)[:, None, :]  # (B,1,S)
    weights = [params[n] for n in W_NAMES]
    return x, attn_bias, weights


def token_classifier_logits(params, input_ids, attention_mask):
    B, S = input_ids.shape
    x, bias, weights = _prep_inputs(params, input_ids, attention_mask)
    n_in = 2 + len(weights)
    logits_pad = pl.pallas_call(
        encoder_logits_kernel,
        out_shape=jax.ShapeDtypeStruct((B, S, C_PAD), jnp.float32),
        in_specs=[pl.BlockSpec(memory_space=pltpu.MemorySpace.VMEM)] * n_in,
        out_specs=pl.BlockSpec(memory_space=pltpu.MemorySpace.VMEM),
    )(x, bias, *weights)
    return logits_pad[..., :NUM_CLASS]


def ner_model_forward(params, input_ids, attention_mask, labels=None):
    """Mirrors NERModel.forward: returns logits, or (loss, logits) when labels given."""
    if labels is None:
        return token_classifier_logits(params, input_ids, attention_mask)

    B, S = input_ids.shape
    x, bias, weights = _prep_inputs(params, input_ids, attention_mask)
    n_in = 3 + len(weights)
    logits_pad, loss = pl.pallas_call(
        encoder_logits_loss_kernel,
        out_shape=(jax.ShapeDtypeStruct((B, S, C_PAD), jnp.float32),
                   jax.ShapeDtypeStruct((1, 1), jnp.float32)),
        in_specs=[pl.BlockSpec(memory_space=pltpu.MemorySpace.VMEM)] * n_in,
        out_specs=(pl.BlockSpec(memory_space=pltpu.MemorySpace.VMEM),
                   pl.BlockSpec(memory_space=pltpu.MemorySpace.SMEM)),
    )(x, bias, labels.astype(jnp.int32), *weights)
    return loss[0, 0], logits_pad[..., :NUM_CLASS]


if __name__ == "__main__":
    key = jax.random.PRNGKey(0)
    pkey, ikey, lkey = jax.random.split(key, 3)
    params = init_params(pkey)

    B, S = 2, 8
    input_ids = jax.random.randint(ikey, (B, S), 0, VOCAB, dtype=jnp.int32)
    attention_mask = jnp.array([[1, 1, 1, 1, 1, 1, 1, 1],
                                [1, 1, 1, 1, 1, 0, 0, 0]], dtype=jnp.int32)
    labels = jax.random.randint(lkey, (B, S), 0, NUM_CLASS, dtype=jnp.int32)
    labels = jnp.where(attention_mask == 1, labels, -1)

    loss, logits = ner_model_forward(params, input_ids, attention_mask, labels)
    logits_only = ner_model_forward(params, input_ids, attention_mask)
    jax.block_until_ready((loss, logits, logits_only))

    assert logits.shape == (B, S, NUM_CLASS)
    assert logits_only.shape == (B, S, NUM_CLASS)
    assert bool(jnp.isfinite(loss))
    print("KERNEL_OK")
</pallas_src>

<mosaic_0001>
module attributes {stable_mosaic.version = 11 : i64} {
  func.func @encoder_logits_loss_kernel(%arg0: memref<2x8x32xf32, #tpu.memory_space<vmem>>, %arg1: memref<2x1x8xf32, #tpu.memory_space<vmem>>, %arg2: memref<2x8xi32, #tpu.memory_space<vmem>>, %arg3: memref<32x96xf32, #tpu.memory_space<vmem>>, %arg4: memref<1x96xf32, #tpu.memory_space<vmem>>, %arg5: memref<32x32xf32, #tpu.memory_space<vmem>>, %arg6: memref<1x32xf32, #tpu.memory_space<vmem>>, %arg7: memref<1x32xf32, #tpu.memory_space<vmem>>, %arg8: memref<1x32xf32, #tpu.memory_space<vmem>>, %arg9: memref<32x64xf32, #tpu.memory_space<vmem>>, %arg10: memref<1x64xf32, #tpu.memory_space<vmem>>, %arg11: memref<64x32xf32, #tpu.memory_space<vmem>>, %arg12: memref<1x32xf32, #tpu.memory_space<vmem>>, %arg13: memref<1x32xf32, #tpu.memory_space<vmem>>, %arg14: memref<1x32xf32, #tpu.memory_space<vmem>>, %arg15: memref<32x128xf32, #tpu.memory_space<vmem>>, %arg16: memref<1x128xf32, #tpu.memory_space<vmem>>, %arg17: memref<2x8x128xf32, #tpu.memory_space<vmem>>, %arg18: memref<1x1xf32, #tpu.memory_space<smem>>) attributes {dimension_semantics = [], scalar_prefetch = 0 : i64, scratch_operands = 0 : i64, tpu.core_type = #tpu.core_type<tc>} {
    %c0 = arith.constant 0 : index
    %c0_0 = arith.constant 0 : index
    %c0_1 = arith.constant 0 : index
    %0 = vector.load %arg0[%c0, %c0_0, %c0_1] : memref<2x8x32xf32, #tpu.memory_space<vmem>>, vector<2x8x32xf32>
    %1 = vector.shape_cast %0 : vector<2x8x32xf32> to vector<16x32xf32>
    %c0_2 = arith.constant 0 : index
    %c0_3 = arith.constant 0 : index
    %c0_4 = arith.constant 0 : index
    %2 = vector.load %arg1[%c0_2, %c0_3, %c0_4] : memref<2x1x8xf32, #tpu.memory_space<vmem>>, vector<2x1x8xf32>
    %c0_5 = arith.constant 0 : index
    %c0_6 = arith.constant 0 : index
    %3 = vector.load %arg3[%c0_5, %c0_6] : memref<32x96xf32, #tpu.memory_space<vmem>>, vector<32x96xf32>
    %cst = arith.constant dense<0.000000e+00> : vector<16x96xf32>
    %4 = tpu.matmul %1, %3, %cst {dimension_numbers = #tpu.dot_dimension_numbers<[1], [0], [0], [1], [0, 0, 1, 1], [], []>} : vector<16x32xf32>, vector<32x96xf32>, vector<16x96xf32> -> vector<16x96xf32>
    %c0_7 = arith.constant 0 : index
    %c0_8 = arith.constant 0 : index
    %5 = vector.load %arg4[%c0_7, %c0_8] : memref<1x96xf32, #tpu.memory_space<vmem>>, vector<1x96xf32>
    %6 = vector.broadcast %5 : vector<1x96xf32> to vector<16x96xf32>
    %7 = arith.addf %4, %6 : vector<16x96xf32>
    %8 = vector.extract_strided_slice %7 {offsets = [0, 0], sizes = [16, 16], strides = [1, 1]} : vector<16x96xf32> to vector<16x16xf32>
    %9 = vector.shape_cast %8 : vector<16x16xf32> to vector<2x8x16xf32>
    %10 = vector.extract_strided_slice %7 {offsets = [0, 32], sizes = [16, 16], strides = [1, 1]} : vector<16x96xf32> to vector<16x16xf32>
    %11 = vector.shape_cast %10 : vector<16x16xf32> to vector<2x8x16xf32>
    %12 = vector.extract_strided_slice %7 {offsets = [0, 64], sizes = [16, 16], strides = [1, 1]} : vector<16x96xf32> to vector<16x16xf32>
    %13 = vector.shape_cast %12 : vector<16x16xf32> to vector<2x8x16xf32>
    "tpu.trace_start"() <{level = 10 : i32, message = "bqd,bkd->bqk"}> : () -> ()
    %cst_9 = arith.constant dense<0.000000e+00> : vector<2x8x8xf32>
    %14 = tpu.matmul %9, %11, %cst_9 {dimension_numbers = #tpu.dot_dimension_numbers<[2], [2], [1], [1], [0, 0, 0, 1, 1, 1], [0], [0]>} : vector<2x8x16xf32>, vector<2x8x16xf32>, vector<2x8x8xf32> -> vector<2x8x8xf32>
    "tpu.trace_stop"() : () -> ()
    %cst_10 = arith.constant 2.500000e-01 : f32
    %15 = vector.broadcast %cst_10 : f32 to vector<2x8x8xf32>
    %16 = arith.mulf %14, %15 : vector<2x8x8xf32>
    %17 = vector.broadcast %2 : vector<2x1x8xf32> to vector<2x8x8xf32>
    %18 = arith.addf %16, %17 : vector<2x8x8xf32>
    %cst_11 = arith.constant dense<0xFF800000> : vector<2x8xf32>
    %19 = vector.multi_reduction <maximumf>, %18, %cst_11 [2] : vector<2x8x8xf32> to vector<2x8xf32>
    %20 = vector.shape_cast %19 : vector<2x8xf32> to vector<2x8x1xf32>
    %21 = vector.broadcast %20 : vector<2x8x1xf32> to vector<2x8x8xf32>
    %22 = arith.subf %18, %21 : vector<2x8x8xf32>
    %23 = math.exp %22 : vector<2x8x8xf32>
    %cst_12 = arith.constant dense<0.000000e+00> : vector<2x8xf32>
    %24 = vector.multi_reduction <add>, %23, %cst_12 [2] : vector<2x8x8xf32> to vector<2x8xf32>
    %25 = vector.shape_cast %24 : vector<2x8xf32> to vector<2x8x1xf32>
    %26 = tpu.reciprocal %25 {approx = true} : vector<2x8x1xf32> -> vector<2x8x1xf32>
    %27 = vector.broadcast %26 : vector<2x8x1xf32> to vector<2x8x8xf32>
    %28 = arith.mulf %23, %27 : vector<2x8x8xf32>
    "tpu.trace_start"() <{level = 10 : i32, message = "bqk,bkd->bqd"}> : () -> ()
    %cst_13 = arith.constant dense<0.000000e+00> : vector<2x8x16xf32>
    %29 = tpu.matmul %28, %13, %cst_13 {dimension_numbers = #tpu.dot_dimension_numbers<[2], [1], [1], [2], [0, 0, 0, 1, 1, 2], [0], [0]>} : vector<2x8x8xf32>, vector<2x8x16xf32>, vector<2x8x16xf32> -> vector<2x8x16xf32>
    "tpu.trace_stop"() : () -> ()
    %30 = vector.extract_strided_slice %7 {offsets = [0, 16], sizes = [16, 16], strides = [1, 1]} : vector<16x96xf32> to vector<16x16xf32>
    %31 = vector.shape_cast %30 : vector<16x16xf32> to vector<2x8x16xf32>
    %32 = vector.extract_strided_slice %7 {offsets = [0, 48], sizes = [16, 16], strides = [1, 1]} : vector<16x96xf32> to vector<16x16xf32>
    %33 = vector.shape_cast %32 : vector<16x16xf32> to vector<2x8x16xf32>
    %34 = vector.extract_strided_slice %7 {offsets = [0, 80], sizes = [16, 16], strides = [1, 1]} : vector<16x96xf32> to vector<16x16xf32>
    %35 = vector.shape_cast %34 : vector<16x16xf32> to vector<2x8x16xf32>
    "tpu.trace_start"() <{level = 10 : i32, message = "bqd,bkd->bqk"}> : () -> ()
    %cst_14 = arith.constant dense<0.000000e+00> : vector<2x8x8xf32>
    %36 = tpu.matmul %31, %33, %cst_14 {dimension_numbers = #tpu.dot_dimension_numbers<[2], [2], [1], [1], [0, 0, 0, 1, 1, 1], [0], [0]>} : vector<2x8x16xf32>, vector<2x8x16xf32>, vector<2x8x8xf32> -> vector<2x8x8xf32>
    "tpu.trace_stop"() : () -> ()
    %cst_15 = arith.constant 2.500000e-01 : f32
    %37 = vector.broadcast %cst_15 : f32 to vector<2x8x8xf32>
    %38 = arith.mulf %36, %37 : vector<2x8x8xf32>
    %39 = vector.broadcast %2 : vector<2x1x8xf32> to vector<2x8x8xf32>
    %40 = arith.addf %38, %39 : vector<2x8x8xf32>
    %cst_16 = arith.constant dense<0xFF800000> : vector<2x8xf32>
    %41 = vector.multi_reduction <maximumf>, %40, %cst_16 [2] : vector<2x8x8xf32> to vector<2x8xf32>
    %42 = vector.shape_cast %41 : vector<2x8xf32> to vector<2x8x1xf32>
    %43 = vector.broadcast %42 : vector<2x8x1xf32> to vector<2x8x8xf32>
    %44 = arith.subf %40, %43 : vector<2x8x8xf32>
    %45 = math.exp %44 : vector<2x8x8xf32>
    %cst_17 = arith.constant dense<0.000000e+00> : vector<2x8xf32>
    %46 = vector.multi_reduction <add>, %45, %cst_17 [2] : vector<2x8x8xf32> to vector<2x8xf32>
    %47 = vector.shape_cast %46 : vector<2x8xf32> to vector<2x8x1xf32>
    %48 = tpu.reciprocal %47 {approx = true} : vector<2x8x1xf32> -> vector<2x8x1xf32>
    %49 = vector.broadcast %48 : vector<2x8x1xf32> to vector<2x8x8xf32>
    %50 = arith.mulf %45, %49 : vector<2x8x8xf32>
    "tpu.trace_start"() <{level = 10 : i32, message = "bqk,bkd->bqd"}> : () -> ()
    %cst_18 = arith.constant dense<0.000000e+00> : vector<2x8x16xf32>
    %51 = tpu.matmul %50, %35, %cst_18 {dimension_numbers = #tpu.dot_dimension_numbers<[2], [1], [1], [2], [0, 0, 0, 1, 1, 2], [0], [0]>} : vector<2x8x8xf32>, vector<2x8x16xf32>, vector<2x8x16xf32> -> vector<2x8x16xf32>
    "tpu.trace_stop"() : () -> ()
    %52 = tpu.concatenate %29, %51 in 2 : vector<2x8x16xf32>, vector<2x8x16xf32> -> vector<2x8x32xf32>
    %53 = vector.shape_cast %52 : vector<2x8x32xf32> to vector<16x32xf32>
    %c0_19 = arith.constant 0 : index
    %c0_20 = arith.constant 0 : index
    %54 = vector.load %arg5[%c0_19, %c0_20] : memref<32x32xf32, #tpu.memory_space<vmem>>, vector<32x32xf32>
    %cst_21 = arith.constant dense<0.000000e+00> : vector<16x32xf32>
    %55 = tpu.matmul %53, %54, %cst_21 {dimension_numbers = #tpu.dot_dimension_numbers<[1], [0], [0], [1], [0, 0, 1, 1], [], []>} : vector<16x32xf32>, vector<32x32xf32>, vector<16x32xf32> -> vector<16x32xf32>
    %c0_22 = arith.constant 0 : index
    %c0_23 = arith.constant 0 : index
    %56 = vector.load %arg6[%c0_22, %c0_23] : memref<1x32xf32, #tpu.memory_space<vmem>>, vector<1x32xf32>
    %57 = vector.broadcast %56 : vector<1x32xf32> to vector<16x32xf32>
    %58 = arith.addf %55, %57 : vector<16x32xf32>
    %59 = arith.addf %1, %58 : vector<16x32xf32>
    %c0_24 = arith.constant 0 : index
    %c0_25 = arith.constant 0 : index
    %60 = vector.load %arg7[%c0_24, %c0_25] : memref<1x32xf32, #tpu.memory_space<vmem>>, vector<1x32xf32>
    %c0_26 = arith.constant 0 : index
    %c0_27 = arith.constant 0 : index
    %61 = vector.load %arg8[%c0_26, %c0_27] : memref<1x32xf32, #tpu.memory_space<vmem>>, vector<1x32xf32>
    %cst_28 = arith.constant dense<0.000000e+00> : vector<16xf32>
    %62 = vector.multi_reduction <add>, %59, %cst_28 [1] : vector<16x32xf32> to vector<16xf32>
    %63 = vector.shape_cast %62 : vector<16xf32> to vector<16x1xf32>
    %cst_29 = arith.constant 3.200000e+01 : f32
    %64 = vector.broadcast %cst_29 : f32 to vector<16x1xf32>
    %65 = arith.divf %63, %64 : vector<16x1xf32>
    %66 = vector.broadcast %65 : vector<16x1xf32> to vector<16x32xf32>
    %67 = arith.subf %59, %66 : vector<16x32xf32>
    %68 = arith.mulf %67, %67 : vector<16x32xf32>
    %cst_30 = arith.constant dense<0.000000e+00> : vector<16xf32>
    %69 = vector.multi_reduction <add>, %68, %cst_30 [1] : vector<16x32xf32> to vector<16xf32>
    %70 = vector.shape_cast %69 : vector<16xf32> to vector<16x1xf32>
    %cst_31 = arith.constant 3.200000e+01 : f32
    %71 = vector.broadcast %cst_31 : f32 to vector<16x1xf32>
    %72 = arith.divf %70, %71 : vector<16x1xf32>
    %73 = vector.broadcast %65 : vector<16x1xf32> to vector<16x32xf32>
    %74 = arith.subf %59, %73 : vector<16x32xf32>
    %cst_32 = arith.constant 9.99999996E-13 : f32
    %75 = vector.broadcast %cst_32 : f32 to vector<16x1xf32>
    %76 = arith.addf %72, %75 : vector<16x1xf32>
    %77 = math.rsqrt %76 : vector<16x1xf32>
    %78 = vector.broadcast %77 : vector<16x1xf32> to vector<16x32xf32>
    %79 = arith.mulf %74, %78 : vector<16x32xf32>
    %80 = vector.broadcast %60 : vector<1x32xf32> to vector<16x32xf32>
    %81 = arith.mulf %79, %80 : vector<16x32xf32>
    %82 = vector.broadcast %61 : vector<1x32xf32> to vector<16x32xf32>
    %83 = arith.addf %81, %82 : vector<16x32xf32>
    %c0_33 = arith.constant 0 : index
    %c0_34 = arith.constant 0 : index
    %84 = vector.load %arg9[%c0_33, %c0_34] : memref<32x64xf32, #tpu.memory_space<vmem>>, vector<32x64xf32>
    %cst_35 = arith.constant dense<0.000000e+00> : vector<16x64xf32>
    %85 = tpu.matmul %83, %84, %cst_35 {dimension_numbers = #tpu.dot_dimension_numbers<[1], [0], [0], [1], [0, 0, 1, 1], [], []>} : vector<16x32xf32>, vector<32x64xf32>, vector<16x64xf32> -> vector<16x64xf32>
    %c0_36 = arith.constant 0 : index
    %c0_37 = arith.constant 0 : index
    %86 = vector.load %arg10[%c0_36, %c0_37] : memref<1x64xf32, #tpu.memory_space<vmem>>, vector<1x64xf32>
    %87 = vector.broadcast %86 : vector<1x64xf32> to vector<16x64xf32>
    %88 = arith.addf %85, %87 : vector<16x64xf32>
    %cst_38 = arith.constant 5.000000e-01 : f32
    %89 = vector.broadcast %cst_38 : f32 to vector<16x64xf32>
    %90 = arith.mulf %89, %88 : vector<16x64xf32>
    %cst_39 = arith.constant 4.471500e-02 : f32
    %91 = vector.broadcast %cst_39 : f32 to vector<16x64xf32>
    %92 = arith.mulf %91, %88 : vector<16x64xf32>
    %93 = arith.mulf %92, %88 : vector<16x64xf32>
    %94 = arith.mulf %93, %88 : vector<16x64xf32>
    %95 = arith.addf %88, %94 : vector<16x64xf32>
    %cst_40 = arith.constant 0.797884583 : f32
    %96 = vector.broadcast %cst_40 : f32 to vector<16x64xf32>
    %97 = arith.mulf %96, %95 : vector<16x64xf32>
    %98 = math.tanh %97 : vector<16x64xf32>
    %cst_41 = arith.constant 1.000000e+00 : f32
    %99 = vector.broadcast %cst_41 : f32 to vector<16x64xf32>
    %100 = arith.addf %99, %98 : vector<16x64xf32>
    %101 = arith.mulf %90, %100 : vector<16x64xf32>
    %c0_42 = arith.constant 0 : index
    %c0_43 = arith.constant 0 : index
    %102 = vector.load %arg11[%c0_42, %c0_43] : memref<64x32xf32, #tpu.memory_space<vmem>>, vector<64x32xf32>
    %cst_44 = arith.constant dense<0.000000e+00> : vector<16x32xf32>
    %103 = tpu.matmul %101, %102, %cst_44 {dimension_numbers = #tpu.dot_dimension_numbers<[1], [0], [0], [1], [0, 0, 1, 1], [], []>} : vector<16x64xf32>, vector<64x32xf32>, vector<16x32xf32> -> vector<16x32xf32>
    %c0_45 = arith.constant 0 : index
    %c0_46 = arith.constant 0 : index
    %104 = vector.load %arg12[%c0_45, %c0_46] : memref<1x32xf32, #tpu.memory_space<vmem>>, vector<1x32xf32>
    %105 = vector.broadcast %104 : vector<1x32xf32> to vector<16x32xf32>
    %106 = arith.addf %103, %105 : vector<16x32xf32>
    %107 = arith.addf %83, %106 : vector<16x32xf32>
    %c0_47 = arith.constant 0 : index
    %c0_48 = arith.constant 0 : index
    %108 = vector.load %arg13[%c0_47, %c0_48] : memref<1x32xf32, #tpu.memory_space<vmem>>, vector<1x32xf32>
    %c0_49 = arith.constant 0 : index
    %c0_50 = arith.constant 0 : index
    %109 = vector.load %arg14[%c0_49, %c0_50] : memref<1x32xf32, #tpu.memory_space<vmem>>, vector<1x32xf32>
    %cst_51 = arith.constant dense<0.000000e+00> : vector<16xf32>
    %110 = vector.multi_reduction <add>, %107, %cst_51 [1] : vector<16x32xf32> to vector<16xf32>
    %111 = vector.shape_cast %110 : vector<16xf32> to vector<16x1xf32>
    %cst_52 = arith.constant 3.200000e+01 : f32
    %112 = vector.broadcast %cst_52 : f32 to vector<16x1xf32>
    %113 = arith.divf %111, %112 : vector<16x1xf32>
    %114 = vector.broadcast %113 : vector<16x1xf32> to vector<16x32xf32>
    %115 = arith.subf %107, %114 : vector<16x32xf32>
    %116 = arith.mulf %115, %115 : vector<16x32xf32>
    %cst_53 = arith.constant dense<0.000000e+00> : vector<16xf32>
    %117 = vector.multi_reduction <add>, %116, %cst_53 [1] : vector<16x32xf32> to vector<16xf32>
    %118 = vector.shape_cast %117 : vector<16xf32> to vector<16x1xf32>
    %cst_54 = arith.constant 3.200000e+01 : f32
    %119 = vector.broadcast %cst_54 : f32 to vector<16x1xf32>
    %120 = arith.divf %118, %119 : vector<16x1xf32>
    %121 = vector.broadcast %113 : vector<16x1xf32> to vector<16x32xf32>
    %122 = arith.subf %107, %121 : vector<16x32xf32>
    %cst_55 = arith.constant 9.99999996E-13 : f32
    %123 = vector.broadcast %cst_55 : f32 to vector<16x1xf32>
    %124 = arith.addf %120, %123 : vector<16x1xf32>
    %125 = math.rsqrt %124 : vector<16x1xf32>
    %126 = vector.broadcast %125 : vector<16x1xf32> to vector<16x32xf32>
    %127 = arith.mulf %122, %126 : vector<16x32xf32>
    %128 = vector.broadcast %108 : vector<1x32xf32> to vector<16x32xf32>
    %129 = arith.mulf %127, %128 : vector<16x32xf32>
    %130 = vector.broadcast %109 : vector<1x32xf32> to vector<16x32xf32>
    %131 = arith.addf %129, %130 : vector<16x32xf32>
    %c0_56 = arith.constant 0 : index
    %c0_57 = arith.constant 0 : index
    %132 = vector.load %arg15[%c0_56, %c0_57] : memref<32x128xf32, #tpu.memory_space<vmem>>, vector<32x128xf32>
    %cst_58 = arith.constant dense<0.000000e+00> : vector<16x128xf32>
    %133 = tpu.matmul %131, %132, %cst_58 {dimension_numbers = #tpu.dot_dimension_numbers<[1], [0], [0], [1], [0, 0, 1, 1], [], []>} : vector<16x32xf32>, vector<32x128xf32>, vector<16x128xf32> -> vector<16x128xf32>
    %c0_59 = arith.constant 0 : index
    %c0_60 = arith.constant 0 : index
    %134 = vector.load %arg16[%c0_59, %c0_60] : memref<1x128xf32, #tpu.memory_space<vmem>>, vector<1x128xf32>
    %135 = vector.broadcast %134 : vector<1x128xf32> to vector<16x128xf32>
    %136 = arith.addf %133, %135 : vector<16x128xf32>
    %137 = vector.shape_cast %136 : vector<16x128xf32> to vector<2x8x128xf32>
    %c0_61 = arith.constant 0 : index
    %c0_62 = arith.constant 0 : index
    %c0_63 = arith.constant 0 : index
    %138 = vector.load %arg17[%c0_61, %c0_62, %c0_63] : memref<2x8x128xf32, #tpu.memory_space<vmem>>, vector<2x8x128xf32>
    tpu.vector_store %arg17[%c0_61, %c0_62, %c0_63], %137 {strides = array<i32>} : memref<2x8x128xf32, #tpu.memory_space<vmem>>, vector<2x8x128xf32>,
    %c0_64 = arith.constant 0 : index
    %c0_65 = arith.constant 0 : index
    %139 = vector.load %arg2[%c0_64, %c0_65] : memref<2x8xi32, #tpu.memory_space<vmem>>, vector<2x8xi32>
    %140 = vector.shape_cast %139 : vector<2x8xi32> to vector<2x8x1xi32>
    %141 = tpu.iota {dimensions = array<i32: 2>} : vector<2x8x128xi32>
    %c9_i32 = arith.constant 9 : i32
    %142 = vector.broadcast %c9_i32 : i32 to vector<2x8x128xi32>
    %143 = arith.cmpi slt, %141, %142 : vector<2x8x128xi32>
    %cst_66 = arith.constant -1.000000e+09 : f32
    %144 = vector.broadcast %cst_66 : f32 to vector<2x8x128xf32>
    %145 = arith.select %143, %137, %144 : vector<2x8x128xi1>, vector<2x8x128xf32>
    %cst_67 = arith.constant dense<0xFF800000> : vector<2x8xf32>
    %146 = vector.multi_reduction <maximumf>, %145, %cst_67 [2] : vector<2x8x128xf32> to vector<2x8xf32>
    %147 = vector.shape_cast %146 : vector<2x8xf32> to vector<2x8x1xf32>
    %148 = vector.broadcast %147 : vector<2x8x1xf32> to vector<2x8x128xf32>
    %149 = arith.subf %145, %148 : vector<2x8x128xf32>
    %150 = math.exp %149 : vector<2x8x128xf32>
    %cst_68 = arith.constant dense<0.000000e+00> : vector<2x8xf32>
    %151 = vector.multi_reduction <add>, %150, %cst_68 [2] : vector<2x8x128xf32> to vector<2x8xf32>
    %152 = vector.shape_cast %151 : vector<2x8xf32> to vector<2x8x1xf32>
    %153 = math.log %152 : vector<2x8x1xf32>
    %154 = arith.addf %153, %147 : vector<2x8x1xf32>
    %155 = vector.broadcast %140 : vector<2x8x1xi32> to vector<2x8x128xi32>
    %156 = arith.cmpi eq, %141, %155 : vector<2x8x128xi32>
    %157 = arith.extui %156 : vector<2x8x128xi1> to vector<2x8x128xi32>
    %158 = arith.sitofp %157 : vector<2x8x128xi32> to vector<2x8x128xf32>
    %159 = arith.mulf %137, %158 : vector<2x8x128xf32>
    %cst_69 = arith.constant dense<0.000000e+00> : vector<2x8xf32>
    %160 = vector.multi_reduction <add>, %159, %cst_69 [2] : vector<2x8x128xf32> to vector<2x8xf32>
    %161 = vector.shape_cast %160 : vector<2x8xf32> to vector<2x8x1xf32>
    %c-1_i32 = arith.constant -1 : i32
    %162 = vector.broadcast %c-1_i32 : i32 to vector<2x8x1xi32>
    %163 = arith.cmpi ne, %140, %162 : vector<2x8x1xi32>
    %164 = arith.extui %163 : vector<2x8x1xi1> to vector<2x8x1xi32>
    %165 = arith.sitofp %164 : vector<2x8x1xi32> to vector<2x8x1xf32>
    %166 = arith.subf %154, %161 : vector<2x8x1xf32>
    %167 = arith.mulf %166, %165 : vector<2x8x1xf32>
    %168 = vector.shape_cast %167 : vector<2x8x1xf32> to vector<1x2x8x1xf32>
    %cst_70 = arith.constant dense<0.000000e+00> : vector<1xf32>
    %169 = vector.multi_reduction <add>, %168, %cst_70 [1, 2, 3] : vector<1x2x8x1xf32> to vector<1xf32>
    %170 = vector.shape_cast %169 : vector<1xf32> to vector<1x1x1x1xf32>
    %171 = vector.extract %170[0, 0, 0, 0] : f32 from vector<1x1x1x1xf32>
    %172 = vector.shape_cast %165 : vector<2x8x1xf32> to vector<1x2x8x1xf32>
    %cst_71 = arith.constant dense<0.000000e+00> : vector<1xf32>
    %173 = vector.multi_reduction <add>, %172, %cst_71 [1, 2, 3] : vector<1x2x8x1xf32> to vector<1xf32>
    %174 = vector.shape_cast %173 : vector<1xf32> to vector<1x1x1x1xf32>
    %175 = vector.extract %174[0, 0, 0, 0] : f32 from vector<1x1x1x1xf32>
    %cst_72 = arith.constant 1.000000e+00 : f32
    %176 = arith.maximumf %175, %cst_72 : f32
    %177 = arith.divf %171, %176 : f32
    %c0_73 = arith.constant 0 : index
    %c0_74 = arith.constant 0 : index
    %178 = memref.load %arg18[%c0_73, %c0_74] : memref<1x1xf32, #tpu.memory_space<smem>>
    memref.store %177, %arg18[%c0_73, %c0_74] : memref<1x1xf32, #tpu.memory_space<smem>>
    return
  }
}

</mosaic_0001>

<bundles_post_ra>
// kernel: tpu_custom_call.1
= control target key start
LH: loop header
LB: loop body
LE: loop exit
PB: predicated region body
PF: predicated region fallthrough
CT: control target
= control target key end

     0   :  { %s2232_s0 = inlined_call_operand.hbm [shape: f32[2,8,32], index: 0, kind: input, shape index: {}]   ;;  %s2233_s1 = inlined_call_operand.vmem [shape: f32[2,1,8], index: 1, kind: input, shape index: {}]   ;;  %s2234_s2 = inlined_call_operand.vmem [shape: s32[2,8], index: 2, kind: input, shape index: {}]   ;;  %s2235_s3 = inlined_call_operand.vmem [shape: f32[32,96], index: 3, kind: input, shape index: {}]   ;;  %s2236_s4 = inlined_call_operand.vmem [shape: f32[1,96], index: 4, kind: input, shape index: {}]   ;;  %s2237_s5 = inlined_call_operand.vmem [shape: f32[32,32], index: 5, kind: input, shape index: {}]   ;;  %s2238_s6 = inlined_call_operand.vmem [shape: f32[1,32], index: 6, kind: input, shape index: {}]   ;;  %s2239_s7 = inlined_call_operand.vmem [shape: f32[1,32], index: 7, kind: input, shape index: {}]   ;;  %s2240_s8 = inlined_call_operand.vmem [shape: f32[1,32], index: 8, kind: input, shape index: {}]   ;;  %s2241_s9 = inlined_call_operand.vmem [shape: f32[32,64], index: 9, kind: input, shape index: {}]   ;;  %s2242_s10 = inlined_call_operand.vmem [shape: f32[1,64], index: 10, kind: input, shape index: {}]   ;;  %s2243_s11 = inlined_call_operand.vmem [shape: f32[64,32], index: 11, kind: input, shape index: {}]   ;;  %s2244_s12 = inlined_call_operand.vmem [shape: f32[1,32], index: 12, kind: input, shape index: {}]   ;;  %s2245_s13 = inlined_call_operand.vmem [shape: f32[1,32], index: 13, kind: input, shape index: {}]   ;;  %s2246_s14 = inlined_call_operand.vmem [shape: f32[1,32], index: 14, kind: input, shape index: {}]   ;;  %s2247_s15 = inlined_call_operand.hbm [shape: f32[32,128], index: 15, kind: input, shape index: {}]   ;;  %s2248_s16 = inlined_call_operand.vmem [shape: f32[1,128], index: 16, kind: input, shape index: {}]   ;;  %s2249_s17 = inlined_call_operand.hbm [shape: f32[2,8,128], index: 17, kind: output, shape index: {0}]   ;;  %s2250_s18 = inlined_call_operand.hbm [shape: f32[1,1], index: 18, kind: output, shape index: {1}]  }
   0x1   :  { %2254 = sst [smem:[#allocation14_spill]] %s2232_s0 }
   0x2   :  { %2255 = sst [smem:[#allocation15_spill]] %s2233_s1 }
   0x3   :  { %2256 = sst [smem:[#allocation16_spill]] %s2234_s2 }
   0x4   :  { %2257 = sst [smem:[#allocation17_spill]] %s2250_s18 }
   0x5   :  { %24 = vsyncpa [#allocation3], 0 }
   0x6   :  { %25 = vsyncpa [#allocation7], 0 }
   0x7   :  { %26 = vsyncpa [#allocation4], 0 }
   0x8   :  { %27 = vsyncpa [#allocation5], 0  ;;  %s1867_s27 = smov [#allocation2]   ;;  %s2258_s0 = sld [smem:[#allocation14_spill]] }
   0x9   :  { %s33_s28 = sshll.u32 %s1867_s27, 4  ;;  %s34_s28 = int_to_ptr.vmem [resolvable:$true] %s33_s28 }
   0xe   :  { %s1783_s19 = scalar_lea.hbm %s2258_s0, 256 }
   0xf   :  { %p1784_p0 = scmp.ne.s32.totalorder %s2258_s0, %s1783_s19  ;;  %p1787_p1 = scmp.lt.u32.totalorder %s1783_s19, %s2258_s0 }
  0x11   :  { %p1789_p2 = pnand %p1787_p1, %p1784_p0 }
  0x13   :  { %1792 = shalt.err (!%p1789_p2)
}
  0x14   :  { %s1793_s2 = scalar_lea.vmem %s34_s28, 256  ;;  %p1798_p4 = scmp.lt.s32.totalorder %s34_s28, %s34_s28 }
  0x15   :  { %p1794_p3 = scmp.ne.s32.totalorder %s34_s28, %s1793_s2  ;;  %p1799_p5 = scmp.lt.s32.totalorder %s1793_s2, %s1793_s2 }
  0x17   :  { %p1800_p6 = por %p1799_p5, %p1798_p4 }
  0x19   :  { %p1801_p7 = pnand %p1800_p6, %p1794_p3 }
  0x1b   :  { %1804 = shalt.err (!%p1801_p7)
}
  0x1c   :  { %s1868_s23 = smov 128   ;;  %s1869_s24 = smov 8  }
  0x1d   :  { %39 = dma.hbm_to_vmem [thread:$0]  %s2258_s0, 256, %s34_s28, [#allocation3], %s1868_s23, %s1868_s23, %s1869_s24  }
  0x1e   :  { %s1870_s27 = smov [#allocation6]   ;;  %s1805_s1 = scalar_lea.hbm %s2247_s15, 512 }
  0x1f   :  { %s73_s29 = sshll.u32 %s1870_s27, 4  ;;  %p1806_p8 = scmp.ne.s32.totalorder %s2247_s15, %s1805_s1  ;;  %s74_s29 = int_to_ptr.vmem [resolvable:$true] %s73_s29 }
  0x20   :  { %p1809_p9 = scmp.lt.u32.totalorder %s1805_s1, %s2247_s15 }
  0x22   :  { %p1811_p10 = pnand %p1809_p9, %p1806_p8 }
  0x24   :  { %1814 = shalt.err (!%p1811_p10)
}
  0x25   :  { %s1815_s18 = scalar_lea.vmem %s74_s29, 512  ;;  %p1820_p12 = scmp.lt.s32.totalorder %s74_s29, %s74_s29 }
  0x26   :  { %p1816_p11 = scmp.ne.s32.totalorder %s74_s29, %s1815_s18  ;;  %p1821_p13 = scmp.lt.s32.totalorder %s1815_s18, %s1815_s18 }
  0x28   :  { %p1822_p0 = por %p1821_p13, %p1820_p12 }
  0x2a   :  { %p1823_p1 = pnand %p1822_p0, %p1816_p11 }
  0x2c   :  { %1826 = shalt.err (!%p1823_p1)
}
  0x2d   :  { %79 = dma.hbm_to_vmem [thread:$0]  %s2247_s15, 512, %s74_s29, [#allocation7], %s1868_s23, %s1868_s23, %s1869_s24  }
  0x2e   :  { %1859 = dma.done.wait [#allocation3], 256  }
  0x2f   :  { %1860 = vsyncadd [#allocation3], 4294967040 }
  0x30   :  { %1861 = dma.done.wait [#allocation7], 512  }
  0x31   :  { %1862 = vsyncadd [#allocation7], 4294966784  ;;  %vm103_vm0 = vcmask 261120   ;;  %v92_v0 = vld [vmem:[%s2235_s3] sm:$0xff]  ;;  %v93_v1 = vld [vmem:[%s2235_s3 + $0x8] sm:$0xff]  ;;  %v1871_v8 = vmov 0.0  }
  0x32   :  { %v94_v2 = vld [vmem:[%s2235_s3 + $0x10] sm:$0xff]  ;;  %v1676_v3 = vpack.c.bf16 %v93_v1, %v92_v0  ;;  %v95_v4 = vld [vmem:[%s2235_s3 + $0x18] sm:$0xff]  ;;  %v2019_v5 = vld [vmem:[#allocation2] sm:$0xff]  ;;  %1584 = vmatprep.subr.mxu1 %v1871_v8  ;;  %vm1872_vm1 = vmmov 0   ;;  %s1873_s20 = smov 96   ;;  %vm188_vm2 = vcmask 130048  }
  0x33   :  { %v1680_v6 = vpack.c.bf16 %v95_v4, %v94_v2  ;;  %1581 = vmatprep.mubr.msk.f32.mxu0 %vm103_vm0, %v2019_v5  ;;  %v2023_v7 = vld [vmem:[#allocation2 + $0x8] sm:$0xff]  ;;  %1586 = vmatprep.mubr.msk.f32.mxu1 %vm1872_vm1, %v1871_v8  ;;  %v1486_v9 = vld [vmem:[%s2236_s4] ss:$0 sm:$0xff]  ;;  %s2259_s22 = sld [smem:[#allocation15_spill]]  ;;  %vm356_vm3 = vcmask 64512   ;;  %s1874_s0 = smov 64  }
  0x34   :  { %1677 = vmatprep.subr.bf16.mxu0 %v1676_v3  ;;  %s1875_s25 = smov 80   ;;  %s1876_s26 = smov 112   ;;  %vm1139_vm4 = vcmask 523264   ;;  %vm1423_vm10 = vcmask 7168  }
  0x35   :  { %1679 = vmatpush3.bf16.msra.mxu0 %v1676_v3  ;;  %s1877_s18 = smov 48   ;;  %s1878_s4 = smov 16  }
  0x36   :  { %1681 = vmatprep.subr.bf16.mxu0 %v1680_v6  ;;  %s2260_s15 = sld [smem:[#allocation16_spill]] }
  0x39   :  { %1683 = vmatpush3.bf16.msra.mxu0 %v1680_v6  ;;  %v2057_v17 = vld [vmem:[%s2259_s22] ss:$0 sm:$0xff]  ;;  %v2063_v22 = vld [vmem:[%s2259_s22 + $0x1] ss:$0 sm:$0xff] }
  0x3a   :  { %1604 = vmatprep.subr.mxu0 %v1871_v8 }
  0x3c   :  { %1582 = vmatmul.mubr.msk.f32.vlgmr.msra.gmra.mrb[0].mxu0 %vm103_vm0, %v2023_v7 }
  0x3d   :  { %1606 = vmatprep.mubr.msk.f32.mxu0 %vm1872_vm1, %v1871_v8 }
 0x10f   :  { %v1583_v10 = vpop.f32.mrb[0].mxu0 }
 0x110   :  { %v176_v11 = vpop.f32.mrb[1].mxu0  ;;  %v2039_v13 = vadd.f32 %v1583_v10, %v1486_v9 }
 0x111   :  { %v2036_v12 = vadd.f32 %v1486_v9, %v176_v11 }
 0x113   :  { %186 = vrot.lane.b32.xlu0 %v2036_v12, %s1873_s20 }
 0x117   :  { %264 = vrot.lane.b32.xlu0 %v2039_v13, %s1873_s20 }
 0x185   :  { %v187_v14 = vpop.permute.xlu0 %186 }
 0x186   :  { %1585 = vmatpush3.xpose.msk.msra.mxu1 %vm188_vm2, %v187_v14 }
 0x187   :  { %1589 = vmatprep.subr.mxu1 %v1871_v8 }
 0x189   :  { %1587 = vmatmul.mubr.msk.f32.vlgmr.msra.gmra.mrb[0].mxu1 %vm188_vm2, %v2036_v12  ;;  %v265_v15 = vpop.permute.xlu0 %264 }
 0x18a   :  { %1590 = vmatpush3.xpose.msk.msra.mxu1 %vm188_vm2, %v265_v15  ;;  %1591 = vmatprep.mubr.msk.f32.mxu1 %vm1872_vm1, %v1871_v8 }
 0x18b   :  { %1594 = vmatprep.subr.mxu1 %v1871_v8 }
 0x18d   :  { %1592 = vmatmul.mubr.msk.f32.vlgmr.msra.gmra.mrb[2].mxu1 %vm188_vm2, %v2039_v13 }
 0x18e   :  { %1596 = vmatprep.mubr.msk.f32.mxu1 %vm1872_vm1, %v1871_v8 }
 0x25c   :  { %v259_v16 = vpop.f32.mrb[0].mxu1 }
 0x25d   :  { %v340_v18 = vmul.f32 0.25, %v259_v16  ;;  %v1588_v19 = vpop.f32.mrb[1].mxu1 }
 0x25f   :  { %v354_v20 = vadd.f32 %v2057_v17, %v340_v18 }
 0x260   :  { %v336_v21 = vpop.f32.mrb[2].mxu1 }
 0x261   :  { %v341_v23 = vmul.f32 0.25, %v336_v21  ;;  %v1593_v24 = vpop.f32.mrb[3].mxu1  ;;  %v357_v25 = vsel %vm356_vm3, %v354_v20, -inf }
 0x262   :  { %358 = vmax.xlane.f32.xlu1 %v357_v25  ;;  %v877_v24 = vld [vmem:[%s2237_s5 + $0x10] sm:$0xff]  ;;  %v878_v25 = vld [vmem:[%s2237_s5 + $0x18] sm:$0xff] }
 0x263   :  { %v355_v26 = vadd.f32 %v2063_v22, %v341_v23 }
 0x265   :  { %v360_v27 = vsel %vm356_vm3, %v355_v26, -inf }
 0x266   :  { %361 = vmax.xlane.f32.xlu1 %v360_v27 }
 0x277   :  { %379 = vrot.lane.b32.xlu1 %v2036_v12, %s1874_s0 }
 0x27b   :  { %455 = vrot.lane.b32.xlu1 %v2039_v13, %s1874_s0 }
 0x27f   :  { %533 = vrot.lane.b32.xlu1 %v2036_v12, %s1875_s25 }
 0x283   :  { %611 = vrot.lane.b32.xlu1 %v2039_v13, %s1875_s25 }
 0x2ef   :  { %v359_v28 = vpop.xlane.xlu1 %358 }
 0x2f0   :  { %v363_v29 = vsub.f32 %v354_v20, %v359_v28 }
 0x2f2   :  { %v365_v30 = vmul.f32 1.442695, %v363_v29 }
 0x2f3   :  { %v362_v31 = vpop.xlane.xlu1 %361 }
 0x2f4   :  { %1745 = vpow2.f32 %v365_v30  ;;  %v364_v32 = vsub.f32 %v355_v26, %v362_v31  ;;  %v1688_v26 = vpack.c.bf16 %v878_v25, %v877_v24  ;;  %v1508_v25 = vld [vmem:[%s2242_s10] ss:$0 sm:$0xff] }
 0x2f6   :  { %v367_v33 = vmul.f32 1.442695, %v364_v32 }
 0x2f7   :  { %v380_v34 = vpop.permute.xlu1 %379 }
 0x2f8   :  { %1747 = vpow2.f32 %v367_v33  ;;  %1595 = vmatpush3.msra.mxu1 %v380_v34 }
 0x2f9   :  { %1599 = vmatprep.subr.mxu1 %v1871_v8 }
 0x2fb   :  { %v456_v35 = vpop.permute.xlu1 %455 }
 0x2fe   :  { %v1746_v36 = vpop.eup %1745 }
 0x2ff   :  { %v534_v37 = vpop.permute.xlu1 %533  ;;  %v369_v38 = vsel %vm356_vm3, %v1746_v36, 0.0 }
 0x300   :  { %370 = vadd.xlane.f32.xlu0 %v369_v38  ;;  %1605 = vmatpush3.xpose.msk.msra.mxu0 %vm188_vm2, %v534_v37 }
 0x301   :  { %1614 = vmatprep.subr.mxu0 %v1871_v8 }
 0x302   :  { %v1748_v39 = vpop.eup %1747 }
 0x303   :  { %v372_v40 = vsel %vm356_vm3, %v1748_v39, 0.0  ;;  %v612_v41 = vpop.permute.xlu1 %611 }
 0x304   :  { %373 = vadd.xlane.f32.xlu1 %v372_v40 }
 0x315   :  { %609 = vrot.lane.b32.xlu1 %v2039_v13, %s1876_s26 }
 0x316   :  { %531 = vrot.lane.b32.xlu0 %v2036_v12, %s1876_s26 }
 0x38d   :  { %v371_v42 = vpop.xlane.xlu0 %370 }
 0x38e   :  { %1749 = vrcp.f32 %v371_v42 }
 0x391   :  { %v374_v43 = vpop.xlane.xlu1 %373  ;;  %v532_v44 = vpop.permute.xlu0 %531 }
 0x392   :  { %1751 = vrcp.f32 %v374_v43  ;;  %1607 = vmatmul.mubr.msk.f32.vlgmr.msra.gmra.mrb[2].mxu0 %vm188_vm2, %v532_v44 }
 0x393   :  { %1616 = vmatprep.mubr.msk.f32.mxu0 %vm1872_vm1, %v1871_v8 }
 0x395   :  { %v610_v49 = vpop.permute.xlu1 %609 }
 0x398   :  { %v1750_v45 = vpop.eup %1749 }
 0x399   :  { %v377_v46 = vmul.f32 %v1750_v45, %v1746_v36 }
 0x39b   :  { %1597 = vmatmul.mubr.msk.f32.vlgmr.msra.gmra.mrb[4].mxu1 %vm356_vm3, %v377_v46 }
 0x39c   :  { %v1752_v47 = vpop.eup %1751  ;;  %1600 = vmatpush3.msra.mxu1 %v456_v35  ;;  %1601 = vmatprep.mubr.msk.f32.mxu1 %vm1872_vm1, %v1871_v8  ;;  %v1503_v35 = vld [vmem:[%s2238_s6] ss:$0 sm:$0xff] }
 0x39d   :  { %v378_v48 = vmul.f32 %v1752_v47, %v1748_v39  ;;  %1609 = vmatprep.subr.mxu1 %v1871_v8 }
 0x39f   :  { %1602 = vmatmul.mubr.msk.f32.vlgmr.msra.gmra.mrb[6].mxu1 %vm356_vm3, %v378_v48 }
 0x3a0   :  { %1611 = vmatprep.mubr.msk.f32.mxu1 %vm1872_vm1, %v1871_v8 }
 0x3a3   :  { %1610 = vmatpush3.xpose.msk.msra.mxu1 %vm188_vm2, %v612_v41 }
 0x3a4   :  { %1619 = vmatprep.subr.mxu1 %v1871_v8 }
 0x3a6   :  { %1612 = vmatmul.mubr.msk.f32.vlgmr.msra.gmra.mrb[8].mxu1 %vm188_vm2, %v610_v49 }
 0x3a7   :  { %1621 = vmatprep.mubr.msk.f32.mxu1 %vm1872_vm1, %v1871_v8 }
 0x465   :  { %v605_v50 = vpop.f32.mrb[2].mxu0 }
 0x466   :  { %v687_v51 = vmul.f32 0.25, %v605_v50  ;;  %v1608_v52 = vpop.f32.mrb[3].mxu0 }
 0x468   :  { %v689_v53 = vadd.f32 %v2057_v17, %v687_v51 }
 0x46a   :  { %v691_v54 = vsel %vm356_vm3, %v689_v53, -inf }
 0x46b   :  { %692 = vmax.xlane.f32.xlu1 %v691_v54 }
 0x46e   :  { %v451_v55 = vpop.f32.mrb[4].mxu1 }
 0x46f   :  { %v1598_v56 = vpop.f32.mrb[5].mxu1 }
 0x470   :  { %v1017_v56 = vld [vmem:[%s2241_s9 + $0x18] sm:$0xff] }
 0x472   :  { %v527_v57 = vpop.f32.mrb[6].mxu1 }
 0x473   :  { %v1603_v58 = vpop.f32.mrb[7].mxu1 }
 0x479   :  { %v683_v59 = vpop.f32.mrb[8].mxu1 }
 0x47a   :  { %v688_v60 = vmul.f32 0.25, %v683_v59  ;;  %v1613_v61 = vpop.f32.mrb[9].mxu1 }
 0x47c   :  { %v690_v62 = vadd.f32 %v2063_v22, %v688_v60  ;;  %v875_v22 = vld [vmem:[%s2237_s5] sm:$0xff] }
 0x47e   :  { %v694_v63 = vsel %vm356_vm3, %v690_v62, -inf }
 0x47f   :  { %695 = vmax.xlane.f32.xlu0 %v694_v63 }
 0x495   :  { %789 = vrot.lane.b32.xlu0 %v2039_v13, %s1877_s18 }
 0x4f8   :  { %v693_v0 = vpop.xlane.xlu1 %692 }
 0x4f9   :  { %v697_v1 = vsub.f32 %v689_v53, %v693_v0  ;;  %v1015_v53 = vld [vmem:[%s2241_s9 + $0x8] sm:$0xff] }
 0x4fb   :  { %v699_v2 = vmul.f32 1.442695, %v697_v1  ;;  %v1506_v1 = vld [vmem:[%s2239_s7] ss:$0 sm:$0xff] }
 0x4fd   :  { %1753 = vpow2.f32 %v699_v2 }
 0x507   :  { %v1754_v3 = vpop.eup %1753 }
 0x508   :  { %v703_v4 = vsel %vm356_vm3, %v1754_v3, 0.0 }
 0x509   :  { %704 = vadd.xlane.f32.xlu1 %v703_v4 }
 0x50c   :  { %v696_v6 = vpop.xlane.xlu0 %695 }
 0x50d   :  { %v698_v9 = vsub.f32 %v690_v62, %v696_v6 }
 0x50f   :  { %v701_v10 = vmul.f32 1.442695, %v698_v9 }
 0x510   :  { %v790_v11 = vpop.permute.xlu0 %789 }
 0x511   :  { %1755 = vpow2.f32 %v701_v10  ;;  %1620 = vmatpush3.msra.mxu1 %v790_v11 }
 0x51b   :  { %v1756_v14 = vpop.eup %1755 }
 0x51c   :  { %v706_v15 = vsel %vm356_vm3, %v1756_v14, 0.0 }
 0x51d   :  { %707 = vadd.xlane.f32.xlu1 %v706_v15  ;;  %v1124_v15 = vld [vmem:[%s2243_s11] sm:$0xff] }
 0x52e   :  { %713 = vrot.lane.b32.xlu1 %v2036_v12, %s1877_s18  ;;  %v876_v12 = vld [vmem:[%s2237_s5 + $0x8] sm:$0xff] }
 0x52f   :  { %v1684_v23 = vpack.c.bf16 %v876_v12, %v875_v22  ;;  %v1130_v12 = vld [vmem:[%s2243_s11 + $0x30] sm:$0xff] }
 0x596   :  { %v705_v13 = vpop.xlane.xlu1 %704 }
 0x597   :  { %1757 = vrcp.f32 %v705_v13  ;;  %v1125_v13 = vld [vmem:[%s2243_s11 + $0x8] sm:$0xff] }
 0x5a1   :  { %v1758_v17 = vpop.eup %1757 }
 0x5a2   :  { %v711_v18 = vmul.f32 %v1758_v17, %v1754_v3  ;;  %v1507_v3 = vld [vmem:[%s2240_s8] ss:$0 sm:$0xff]  ;;  %v1126_v17 = vld [vmem:[%s2243_s11 + $0x10] sm:$0xff] }
 0x5aa   :  { %v708_v16 = vpop.xlane.xlu1 %707 }
 0x5ab   :  { %1759 = vrcp.f32 %v708_v16  ;;  %v1700_v16 = vpack.c.bf16 %v1125_v13, %v1124_v15 }
 0x5ae   :  { %v714_v19 = vpop.permute.xlu1 %713 }
 0x5af   :  { %1615 = vmatpush3.msra.mxu0 %v714_v19  ;;  %v1128_v19 = vld [vmem:[%s2243_s11 + $0x20] sm:$0xff] }
 0x5b0   :  { %1617 = vmatmul.mubr.msk.f32.vlgmr.msra.gmra.mrb[4].mxu0 %vm356_vm3, %v711_v18  ;;  %1685 = vmatprep.subr.bf16.mxu0 %v1684_v23  ;;  %v1127_v18 = vld [vmem:[%s2243_s11 + $0x18] sm:$0xff] }
 0x5b1   :  { %1687 = vmatpush3.bf16.msra.mxu0 %v1684_v23  ;;  %v1131_v23 = vld [vmem:[%s2243_s11 + $0x38] sm:$0xff] }
 0x5b2   :  { %1689 = vmatprep.subr.bf16.mxu0 %v1688_v26  ;;  %v1712_v24 = vpack.c.bf16 %v1131_v23, %v1130_v12 }
 0x5b5   :  { %v1760_v20 = vpop.eup %1759  ;;  %1691 = vmatpush3.bf16.msra.mxu0 %v1688_v26 }
 0x5b6   :  { %v712_v21 = vmul.f32 %v1760_v20, %v1756_v14  ;;  %1701 = vmatprep.subr.bf16.mxu0 %v1700_v16  ;;  %v1704_v20 = vpack.c.bf16 %v1127_v18, %v1126_v17  ;;  %v1514_v18 = vld [vmem:[%s2245_s13] ss:$0 sm:$0xff] }
 0x5b8   :  { %1622 = vmatmul.mubr.msk.f32.vlgmr.msra.gmra.mrb[10].mxu1 %vm356_vm3, %v712_v21  ;;  %v1129_v21 = vld [vmem:[%s2243_s11 + $0x28] sm:$0xff] }
 0x5b9   :  { %v1708_v22 = vpack.c.bf16 %v1129_v21, %v1128_v19 }
 0x683   :  { %v785_v27 = vpop.f32.mrb[4].mxu0 }
 0x684   :  { %867 = vrot.lane.b32.xlu1 %v785_v27, %s1878_s4  ;;  %v1618_v28 = vpop.f32.mrb[5].mxu0 }
 0x68b   :  { %v861_v29 = vpop.f32.mrb[10].mxu1 }
 0x68c   :  { %869 = vrot.lane.b32.xlu1 %v861_v29, %s1878_s4  ;;  %v1623_v30 = vpop.f32.mrb[11].mxu1 }
 0x6f6   :  { %v868_v31 = vpop.permute.xlu1 %867 }
 0x6f7   :  { %v873_v32 = vsel %vm188_vm2, %v451_v55, %v868_v31  ;;  %v1016_v55 = vld [vmem:[%s2241_s9 + $0x10] sm:$0xff] }
 0x6f8   :  { %1632 = vmatprep.mubr.msk.f32.mxu0 %vm103_vm0, %v873_v32 }
 0x6fe   :  { %v870_v33 = vpop.permute.xlu1 %869 }
 0x6ff   :  { %v874_v34 = vsel %vm188_vm2, %v527_v57, %v870_v33  ;;  %v1696_v57 = vpack.c.bf16 %v1017_v56, %v1016_v55 }
 0x700   :  { %1633 = vmatmul.mubr.msk.f32.vlgmr.msra.gmra.mrb[6].mxu0 %vm103_vm0, %v874_v34 }
 0x701   :  { %1703 = vmatpush3.bf16.msra.mxu0 %v1700_v16 }
 0x702   :  { %1705 = vmatprep.subr.bf16.mxu0 %v1704_v20 }
 0x705   :  { %1707 = vmatpush3.bf16.msra.mxu0 %v1704_v20 }
 0x706   :  { %1709 = vmatprep.subr.bf16.mxu0 %v1708_v22 }
 0x709   :  { %1711 = vmatpush3.bf16.msra.mxu0 %v1708_v22  ;;  %v1515_v22 = vld [vmem:[%s2246_s14] ss:$0 sm:$0xff] }
 0x70a   :  { %1713 = vmatprep.subr.bf16.mxu0 %v1712_v24 }
 0x70d   :  { %1715 = vmatpush3.bf16.msra.mxu0 %v1712_v24 }
 0x7d3   :  { %v1634_v36 = vpop.f32.mrb[6].mxu0 }
 0x7d4   :  { %v964_v37 = vadd.f32 %v1634_v36, %v1503_v35  ;;  %v958_v38 = vpop.f32.mrb[7].mxu0 }
 0x7d5   :  { %v959_v39 = vadd.f32 %v1503_v35, %v958_v38 }
 0x7d6   :  { %v968_v40 = vadd.f32 %v964_v37, %v2023_v7 }
 0x7d7   :  { %v967_v41 = vadd.f32 %v959_v39, %v2019_v5  ;;  %v1014_v5 = vld [vmem:[%s2241_s9] sm:$0xff] }
 0x7d8   :  { %v974_v42 = vsel %vm103_vm0, %v968_v40, 0.0  ;;  %v1692_v54 = vpack.c.bf16 %v1015_v53, %v1014_v5 }
 0x7d9   :  { %975 = vadd.xlane.f32.xlu1 %v974_v42  ;;  %v971_v43 = vsel %vm103_vm0, %v967_v41, 0.0 }
 0x7da   :  { %972 = vadd.xlane.f32.xlu0 %v971_v43  ;;  %1693 = vmatprep.subr.bf16.mxu1 %v1692_v54 }
 0x7db   :  { %1695 = vmatpush3.bf16.msra.mxu1 %v1692_v54 }
 0x7dc   :  { %1697 = vmatprep.subr.bf16.mxu1 %v1696_v57 }
 0x7df   :  { %1699 = vmatpush3.bf16.msra.mxu1 %v1696_v57 }
 0x866   :  { %v976_v44 = vpop.xlane.xlu1 %975 }
 0x867   :  { %v979_v45 = vmul.f32 0.03125, %v976_v44  ;;  %v973_v46 = vpop.xlane.xlu0 %972 }
 0x868   :  { %v978_v47 = vmul.f32 0.03125, %v973_v46 }
 0x869   :  { %v981_v48 = vsub.f32 %v968_v40, %v979_v45 }
 0x86a   :  { %v980_v49 = vsub.f32 %v967_v41, %v978_v47 }
 0x86b   :  { %v983_v52 = vmul.f32 %v981_v48, %v981_v48 }
 0x86c   :  { %v982_v50 = vmul.f32 %v980_v49, %v980_v49 }
 0x86d   :  { %v987_v7 = vsel %vm103_vm0, %v983_v52, 0.0 }
 0x86e   :  { %v984_v51 = vsel %vm103_vm0, %v982_v50, 0.0 }
 0x86f   :  { %985 = vadd.xlane.f32.xlu0 %v984_v51 }
 0x873   :  { %988 = vadd.xlane.f32.xlu0 %v987_v7 }
 0x8fc   :  { %v986_v58 = vpop.xlane.xlu0 %985 }
 0x8fd   :  { %v990_v59 = vmul.f32 0.03125, %v986_v58 }
 0x8ff   :  { %v992_v60 = vadd.f32 1e-12, %v990_v59 }
 0x900   :  { %v989_v61 = vpop.xlane.xlu0 %988 }
 0x901   :  { %1761 = vrsqrt.f32 %v992_v60  ;;  %v991_v62 = vmul.f32 0.03125, %v989_v61 }
 0x903   :  { %v993_v63 = vadd.f32 1e-12, %v991_v62 }
 0x905   :  { %1763 = vrsqrt.f32 %v993_v63 }
 0x90b   :  { %v1762_v0 = vpop.eup %1761 }
 0x90c   :  { %v996_v2 = vmul.f32 %v1762_v0, %v980_v49 }
 0x90e   :  { %v1004_v4 = vmul.f32 %v1506_v1, %v996_v2  ;;  %v1268_v2 = vld [vmem:[#allocation6 + $0x8] sm:$0xff] }
 0x90f   :  { %v1764_v6 = vpop.eup %1763 }
 0x910   :  { %v997_v9 = vmul.f32 %v1764_v6, %v981_v48  ;;  %v1012_v10 = vadd.f32 %v1507_v3, %v1004_v4  ;;  %v1511_v48 = vld [vmem:[%s2244_s12] ss:$0 sm:$0xff]  ;;  %v1270_v6 = vld [vmem:[#allocation6 + $0x18] sm:$0xff] }
 0x911   :  { %v1269_v4 = vld [vmem:[#allocation6 + $0x10] sm:$0xff] }
 0x912   :  { %v1005_v11 = vmul.f32 %v1506_v1, %v997_v9  ;;  %1643 = vmatprep.mubr.msk.f32.mxu1 %vm103_vm0, %v1012_v10  ;;  %v1267_v1 = vld [vmem:[#allocation6] sm:$0xff]  ;;  %v1720_v9 = vpack.c.bf16 %v1270_v6, %v1269_v4 }
 0x914   :  { %v1013_v14 = vadd.f32 %v1507_v3, %v1005_v11  ;;  %v1716_v3 = vpack.c.bf16 %v1268_v2, %v1267_v1 }
 0x916   :  { %1644 = vmatmul.mubr.msk.f32.vlgmr.msra.gmra.mrb[12].mxu1 %vm103_vm0, %v1013_v14  ;;  %1717 = vmatprep.subr.bf16.mxu1 %v1716_v3 }
 0x917   :  { %1719 = vmatpush3.bf16.msra.mxu1 %v1716_v3 }
 0x918   :  { %1721 = vmatprep.subr.bf16.mxu1 %v1720_v9 }
 0x91b   :  { %1723 = vmatpush3.bf16.msra.mxu1 %v1720_v9 }
 0x9e9   :  { %v1645_v26 = vpop.f32.mrb[12].mxu1 }
 0x9ea   :  { %v1103_v27 = vadd.f32 %v1645_v26, %v1508_v25  ;;  %v1097_v28 = vpop.f32.mrb[13].mxu1  ;;  %v1362_v26 = vlaneseq }
 0x9eb   :  { %v1098_v29 = vadd.f32 %v1508_v25, %v1097_v28  ;;  %v1516_v28 = vld [vmem:[%s2248_s16] ss:$0 sm:$0xff]  ;;  %s1879_s16 = smov [#allocation8]  }
 0x9ec   :  { %v1109_v30 = vmul.f32 0.044715, %v1103_v27  ;;  %v1107_v45 = vmul.f32 0.5, %v1103_v27  ;;  %s1460_s7 = sshll.u32 %s1879_s16, 4  ;;  %s1461_s7 = int_to_ptr.vmem [resolvable:$true] %s1460_s7 }
 0x9ed   :  { %v1108_v31 = vmul.f32 0.044715, %v1098_v29  ;;  %v1106_v43 = vmul.f32 0.5, %v1098_v29  ;;  %s1827_s3 = scalar_lea.vmem %s1461_s7, 256  ;;  %p1832_p3 = scmp.lt.s32.totalorder %s1461_s7, %s1461_s7 }
 0x9ee   :  { %v1111_v32 = vmul.f32 %v1109_v30, %v1103_v27  ;;  %p1828_p2 = scmp.ne.s32.totalorder %s1461_s7, %s1827_s3  ;;  %p1833_p4 = scmp.lt.s32.totalorder %s1827_s3, %s1827_s3 }
 0x9ef   :  { %v1110_v33 = vmul.f32 %v1108_v31, %v1098_v29 }
 0x9f0   :  { %v1113_v34 = vmul.f32 %v1111_v32, %v1103_v27  ;;  %p1834_p5 = por %p1833_p4, %p1832_p3 }
 0x9f1   :  { %v1112_v35 = vmul.f32 %v1110_v33, %v1098_v29 }
 0x9f2   :  { %v1115_v36 = vadd.f32 %v1113_v34, %v1103_v27  ;;  %v1377_v27 = vand.u32 127, %v1362_v26  ;;  %p1835_p6 = pnand %p1834_p5, %p1828_p2 }
 0x9f3   :  { %v1114_v37 = vadd.f32 %v1112_v35, %v1098_v29  ;;  %v1363_v35 = vshrl.u32 %v1362_v26, 7 }
 0x9f4   :  { %v1117_v38 = vmul.f32 0.7978846, %v1115_v36  ;;  %vm1378_vm5 = vcmp.lt.s32.totalorder %v1377_v27, 9 }
 0x9f5   :  { %v1116_v39 = vmul.f32 0.7978846, %v1114_v37  ;;  %v1364_v36 = vsub.s32 0, %v1363_v35  ;;  %v1361_v37 = vld [vmem:[%s2260_s15] sm:$0x3] }
 0x9f6   :  { %1765 = vtanh.f32 %v1117_v38  ;;  %v1371_v38 = vsub.s32 1, %v1363_v35 }
 0x9f7   :  { %1767 = vtanh.f32 %v1116_v39  ;;  %v1365_v39 = vrot.slane %v1361_v37, %v1364_v36 }
 0xa00   :  { %v1766_v40 = vpop.eup %1765 }
 0xa01   :  { %v1768_v41 = vpop.eup %1767  ;;  %v1121_v42 = vadd.f32 1.0, %v1766_v40  ;;  %v1372_v40 = vrot.slane %v1361_v37, %v1371_v38 }
 0xa02   :  { %v1120_v44 = vadd.f32 1.0, %v1768_v41 }
 0xa03   :  { %v1123_v47 = vmul.f32 %v1121_v42, %v1107_v45 }
 0xa04   :  { %v1122_v46 = vmul.f32 %v1120_v44, %v1106_v43 }
 0xa06   :  { %1662 = vmatprep.mubr.msk.f32.mxu0 %vm1139_vm4, %v1122_v46 }
 0xa07   :  { %1663 = vmatmul.mubr.msk.f32.vlgmr.msra.gmra.mrb[8].mxu0 %vm1139_vm4, %v1123_v47 }
 0xada   :  { %v1664_v49 = vpop.f32.mrb[8].mxu0 }
 0xadb   :  { %v1218_v50 = vadd.f32 %v1664_v49, %v1511_v48  ;;  %v1212_v51 = vpop.f32.mrb[9].mxu0 }
 0xadc   :  { %v1213_v52 = vadd.f32 %v1511_v48, %v1212_v51 }
 0xadd   :  { %v1222_v7 = vadd.f32 %v1218_v50, %v1013_v14 }
 0xade   :  { %v1221_v5 = vadd.f32 %v1213_v52, %v1012_v10 }
 0xadf   :  { %v1228_v53 = vsel %vm103_vm0, %v1222_v7, 0.0 }
 0xae0   :  { %1229 = vadd.xlane.f32.xlu0 %v1228_v53  ;;  %v1225_v54 = vsel %vm103_vm0, %v1221_v5, 0.0 }
 0xae1   :  { %1226 = vadd.xlane.f32.xlu1 %v1225_v54 }
 0xb6d   :  { %v1230_v55 = vpop.xlane.xlu0 %1229 }
 0xb6e   :  { %v1232_v56 = vmul.f32 0.03125, %v1230_v55  ;;  %v1227_v57 = vpop.xlane.xlu1 %1226 }
 0xb6f   :  { %v1231_v58 = vmul.f32 0.03125, %v1227_v57 }
 0xb70   :  { %v1234_v59 = vsub.f32 %v1222_v7, %v1232_v56 }
 0xb71   :  { %v1233_v60 = vsub.f32 %v1221_v5, %v1231_v58 }
 0xb72   :  { %v1236_v61 = vmul.f32 %v1234_v59, %v1234_v59 }
 0xb73   :  { %v1235_v62 = vmul.f32 %v1233_v60, %v1233_v60 }
 0xb74   :  { %v1240_v63 = vsel %vm103_vm0, %v1236_v61, 0.0 }
 0xb75   :  { %1241 = vadd.xlane.f32.xlu0 %v1240_v63  ;;  %v1237_v0 = vsel %vm103_vm0, %v1235_v62, 0.0 }
 0xb76   :  { %1238 = vadd.xlane.f32.xlu1 %v1237_v0 }
 0xc02   :  { %v1242_v10 = vpop.xlane.xlu0 %1241 }
 0xc03   :  { %v1244_v11 = vmul.f32 0.03125, %v1242_v10  ;;  %v1239_v14 = vpop.xlane.xlu1 %1238 }
 0xc04   :  { %v1243_v15 = vmul.f32 0.03125, %v1239_v14 }
 0xc05   :  { %v1246_v13 = vadd.f32 1e-12, %v1244_v11 }
 0xc06   :  { %v1245_v16 = vadd.f32 1e-12, %v1243_v15 }
 0xc07   :  { %1769 = vrsqrt.f32 %v1246_v13 }
 0xc08   :  { %1771 = vrsqrt.f32 %v1245_v16 }
 0xc11   :  { %v1770_v17 = vpop.eup %1769 }
 0xc12   :  { %v1772_v19 = vpop.eup %1771  ;;  %v1250_v20 = vmul.f32 %v1770_v17, %v1234_v59 }
 0xc13   :  { %v1249_v21 = vmul.f32 %v1772_v19, %v1233_v60 }
 0xc14   :  { %v1258_v12 = vmul.f32 %v1514_v18, %v1250_v20 }
 0xc15   :  { %v1257_v23 = vmul.f32 %v1514_v18, %v1249_v21 }
 0xc16   :  { %v1266_v25 = vadd.f32 %v1515_v22, %v1258_v12 }
 0xc17   :  { %v1265_v24 = vadd.f32 %v1515_v22, %v1257_v23 }
 0xc19   :  { %1673 = vmatprep.mubr.msk.f32.mxu1 %vm103_vm0, %v1265_v24 }
 0xc1a   :  { %1674 = vmatmul.mubr.msk.f32.vlgmr.msra.gmra.mrb[14].mxu1 %vm103_vm0, %v1266_v25 }
 0xced   :  { %v1675_v29 = vpop.f32.mrb[14].mxu1 }
 0xcee   :  { %v1356_v30 = vadd.f32 %v1675_v29, %v1516_v28  ;;  %v1350_v31 = vpop.f32.mrb[15].mxu1 }
 0xcef   :  { %v1351_v32 = vadd.f32 %v1516_v28, %v1350_v31 }
 0xcf0   :  { %1360 = vst [vmem:[#allocation8 + $0x8] sm:$0xff] %v1356_v30  ;;  %v1380_v33 = vsel %vm1378_vm5, %v1356_v30, -1e+09 }
 0xcf1   :  { %1359 = vst [vmem:[#allocation8] sm:$0xff] %v1351_v32  ;;  %1383 = vmax.xlane.f32.xlu0 %v1380_v33  ;;  %v1379_v34 = vsel %vm1378_vm5, %v1351_v32, -1e+09 }
 0xcf2   :  { %1381 = vmax.xlane.f32.xlu1 %v1379_v34 }
 0xd03   :  { %1367 = vbcast.lane.b32.xlu1 %v1365_v39, 256 }
 0xd07   :  { %1374 = vbcast.lane.b32.xlu0 %v1372_v40, 256 }
 0xd7e   :  { %v1384_v41 = vpop.xlane.xlu0 %1383 }
 0xd7f   :  { %v1386_v42 = vsub.f32 %v1380_v33, %v1384_v41  ;;  %v1382_v43 = vpop.xlane.xlu1 %1381 }
 0xd80   :  { %v1385_v44 = vsub.f32 %v1379_v34, %v1382_v43 }
 0xd81   :  { %v1389_v45 = vmul.f32 1.442695, %v1386_v42 }
 0xd82   :  { %v1387_v46 = vmul.f32 1.442695, %v1385_v44  ;;  %v1375_v47 = vpop.permute.xlu0 %1374 }
 0xd83   :  { %1773 = vpow2.f32 %v1389_v45  ;;  %v1368_v48 = vpop.permute.xlu1 %1367  ;;  %vm1414_vm6 = vcmp.ne.s32.totalorder %v1375_v47, 4294967295  ;;  %vm1402_vm8 = vcmp.eq.s32.totalorder %v1377_v27, %v1375_v47 }
 0xd84   :  { %1775 = vpow2.f32 %v1387_v46  ;;  %vm1413_vm7 = vcmp.ne.s32.totalorder %v1368_v48, 4294967295  ;;  %vm1401_vm9 = vcmp.eq.s32.totalorder %v1377_v27, %v1368_v48  ;;  %v1522_v49 = vsel %vm1414_vm6, 1.0, %v1871_v8 }
 0xd85   :  { %v1521_v50 = vsel %vm1413_vm7, 1.0, %v1871_v8  ;;  %v1520_v52 = vsel %vm1402_vm8, 1.0, %v1871_v8  ;;  %v1519_v5 = vsel %vm1401_vm9, 1.0, %v1871_v8  ;;  %v1437_v54 = vsel %vm1423_vm10, %v1522_v49, 0.0 }
 0xd86   :  { %v1436_v53 = vsel %vm1423_vm10, %v1521_v50, 0.0  ;;  %v1408_v55 = vmul.f32 %v1520_v52, %v1356_v30  ;;  %v1407_v56 = vmul.f32 %v1519_v5, %v1351_v32 }
 0xd87   :  { %v1438_v57 = vadd.f32 %v1437_v54, %v1436_v53 }
 0xd8d   :  { %v1774_v51 = vpop.eup %1773 }
 0xd8e   :  { %v1776_v7 = vpop.eup %1775  ;;  %1393 = vadd.xlane.f32.xlu0 %v1774_v51 }
 0xd8f   :  { %1391 = vadd.xlane.f32.xlu1 %v1776_v7 }
 0xd92   :  { %1411 = vadd.xlane.f32.xlu0 %v1408_v55 }
 0xd93   :  { %1409 = vadd.xlane.f32.xlu1 %v1407_v56 }
 0xd96   :  { %1439 = vadd.xlane.f32.xlu0 %v1438_v57 }
 0xe1b   :  { %v1394_v58 = vpop.xlane.xlu0 %1393 }
 0xe1c   :  { %1777 = vlog2.f32 %v1394_v58  ;;  %v1392_v59 = vpop.xlane.xlu1 %1391 }
 0xe1d   :  { %1779 = vlog2.f32 %v1392_v59 }
 0xe1f   :  { %v1412_v0 = vpop.xlane.xlu0 %1411 }
 0xe20   :  { %v1410_v3 = vpop.xlane.xlu1 %1409 }
 0xe23   :  { %v1440_v15 = vpop.xlane.xlu0 %1439 }
 0xe24   :  { %v1441_v13 = vrot.slane %v1440_v15, 4 }
 0xe26   :  { %v1778_v60 = vpop.eup %1777  ;;  %v1442_v16 = vadd.f32 %v1441_v13, %v1440_v15 }
 0xe27   :  { %v1780_v61 = vpop.eup %1779  ;;  %v1398_v62 = vmul.f32 0.6931472, %v1778_v60 }
 0xe28   :  { %v1396_v63 = vmul.f32 0.6931472, %v1780_v61  ;;  %v1443_v17 = vrot.slane %v1442_v16, 2 }
 0xe29   :  { %v1400_v8 = vadd.f32 %v1398_v62, %v1384_v41 }
 0xe2a   :  { %v1399_v1 = vadd.f32 %v1396_v63, %v1382_v43 }
 0xe2b   :  { %v1420_v2 = vsub.f32 %v1400_v8, %v1412_v0 }
 0xe2c   :  { %v1419_v4 = vsub.f32 %v1399_v1, %v1410_v3 }
 0xe2d   :  { %v1422_v6 = vmul.f32 %v1522_v49, %v1420_v2 }
 0xe2e   :  { %v1421_v9 = vmul.f32 %v1521_v50, %v1419_v4 }
 0xe2f   :  { %v1425_v10 = vsel %vm1423_vm10, %v1422_v6, 0.0 }
 0xe30   :  { %v1424_v11 = vsel %vm1423_vm10, %v1421_v9, 0.0 }
 0xe31   :  { %v1426_v14 = vadd.f32 %v1425_v10, %v1424_v11 }
 0xe33   :  { %1427 = vadd.xlane.f32.xlu1 %v1426_v14 }
 0xec0   :  { %v1428_v18 = vpop.xlane.xlu1 %1427 }
 0xec1   :  { %v1429_v19 = vrot.slane %v1428_v18, 4 }
 0xec2   :  { %1838 = shalt.err (!%p1835_p6)
}
 0xec3   :  { %s1839_s20 = scalar_lea.hbm %s2249_s17, 256 }
 0xec4   :  { %p1840_p7 = scmp.ne.s32.totalorder %s2249_s17, %s1839_s20  ;;  %p1843_p8 = scmp.lt.u32.totalorder %s1839_s20, %s2249_s17 }
 0xec6   :  { %p1845_p9 = pnand %p1843_p8, %p1840_p7 }
 0xec8   :  { %1848 = shalt.err (!%p1845_p9)
}
 0xec9   :  { %1466 = dma.vmem_to_hbm [thread:$0]  %s1461_s7, 256, %s2249_s17, [#allocation4], %s1868_s23, %s1868_s23, %s1869_s24   ;;  %v1430_v20 = vadd.f32 %v1429_v19, %v1428_v18  ;;  %v1444_v21 = vadd.f32 %v1443_v17, %v1442_v16 }
 0xeca   :  { %s1880_s25 = smov 1.0   ;;  %s2261_s10 = sld [smem:[#allocation17_spill]] }
 0xecb   :  { %v1431_v22 = vrot.slane %v1430_v20, 2  ;;  %v1445_v23 = vrot.slane %v1444_v21, 1 }
 0xecd   :  { %v1432_v12 = vadd.f32 %v1431_v22, %v1430_v20  ;;  %v1446_v26 = vadd.f32 %v1445_v23, %v1444_v21 }
 0xecf   :  { %v1433_v24 = vrot.slane %v1432_v12, 1 }
 0xed0   :  { %s1849_s11 = scalar_lea.hbm %s2261_s10, 16 }
 0xed1   :  { %v1434_v25 = vadd.f32 %v1433_v24, %v1432_v12  ;;  %p1850_p10 = scmp.ne.s32.totalorder %s2261_s10, %s1849_s11  ;;  %p1853_p11 = scmp.lt.u32.totalorder %s1849_s11, %s2261_s10 }
 0xed3   :  { %1724 = vpush %v1434_v25  ;;  %p1855_p12 = pnand %p1853_p11, %p1850_p10 }
 0xed4   :  { %1726 = vpush %v1446_v26 }
 0xf04   :  { %s1725_s28 = spop %1724 }
 0xf05   :  { %s1727_s0 = spop %1726 }
 0xf06   :  { %s1448_s26 = smax.f32 %s1880_s25, %s1727_s0 }
 0xf07   :  { %v1449_v27 = vstv %s1448_s26 }
 0xf08   :  { %1781 = vrcp.f32 %v1449_v27 }
 0xf12   :  { %v1782_v28 = vpop.eup %1781 }
 0xf13   :  { %1728 = vpush %v1782_v28 }
 0xf44   :  { %s1729_s18 = spop %1728 }
 0xf45   :  { %s1452_s17 = smul.f32 %s1729_s18, %s1725_s28 }
 0xf47   :  { %1454 = sst [smem:[#allocation9]] %s1452_s17 }
 0xf48   :  { %1858 = shalt.err (!%p1855_p12)
}
 0xf49   :  { %s1881_s1 = smov [#allocation9]  }
 0xf4a   :  { %1474 = dma.smem_to_hbm %s1881_s1, 16, %s2261_s10, [#allocation5]  }
 0xf4b   :  { %1863 = dma.done.wait [#allocation4], 256  }
 0xf4c   :  { %1864 = vsyncadd [#allocation4], 4294967040 }
 0xf4d   :  { %1865 = dma.done.wait [#allocation5], 16  }
 0xf4e   :  { %1866 = vsyncadd [#allocation5], 4294967280 }
 0xf4f   :  { %1481 = sfence }
 0xf50   :  { %1482 = vsyncpa [#allocation3], 1 }
 0xf51   :  { %1483 = vsyncpa [#allocation7], 1 }
 0xf52   :  { %1484 = vsyncpa [#allocation4], 1 }
 0xf53   :  { %1485 = vsyncpa [#allocation5], 1 }

</bundles_post_ra>
